<compile_context>
chip_gen: v7x
topology: tpu7x:2x2x1
jax: 0.10.0
libtpu: 0.0.40
codegen_flags: <defaults>
</compile_context>

<pallas_src>
import functools
import math

import numpy as np
import jax
import jax.numpy as jnp
from jax.experimental import pallas as pl
from jax.experimental.pallas import tpu as pltpu

# ----------------------------- demo configuration ---------------------------
B = 2          # batch
SQ = 8         # query sequence length
SK = 8         # key / value sequence length
D = 32         # hidden_dim
NHEAD = 4
HEAD_DIM = D // NHEAD
FF = 4 * D
LN_EPS = 1e-5

# MXU operand dtype (accumulation is always f32).  Set to jnp.float32 to
# tighten accuracy to ~1e-3 of the f32 reference (approx reciprocal remains).
MXU_DTYPE = jnp.bfloat16


# ------------------------------- kernel -------------------------------------
def _make_kernel(*, RQ, RK, CK, D, FF, nhead, eps):
    """RQ/RK: query/key rows per block; CK = nhead*RK blocked score columns."""
    cdt = MXU_DTYPE

    def kernel(act_ref, wn_ref, w1_ref, vec_ref, sbg_ref, hm_ref, bd_ref, out_ref):
        f32 = jnp.float32

        # ---- activation slab: rows = [x | query | key | value] -------------
        x = act_ref[0:RQ, :]                                        # f32 (RQ, D)
        qs = act_ref[RQ:2 * RQ, :].astype(cdt)
        ks = act_ref[2 * RQ:2 * RQ + RK, :].astype(cdt)
        vs = act_ref[2 * RQ + RK:2 * RQ + 2 * RK, :].astype(cdt)

        # ---- weight slab: rows = [WqT*scale | WkT | WvT | WoT | W2T] -------
        wq = wn_ref[0:D, :]
        wk = wn_ref[D:2 * D, :]
        wv = wn_ref[2 * D:3 * D, :]
        wo = wn_ref[3 * D:4 * D, :]
        w2 = wn_ref[4 * D:4 * D + FF, :]

        # ---- bias / LayerNorm vector slab ----------------------------------
        bq = vec_ref[0:1, 0:D]
        bk = vec_ref[1:2, 0:D]
        bv = vec_ref[2:3, 0:D]
        bo = vec_ref[3:4, 0:D]
        b2 = vec_ref[4:5, 0:D]
        g1 = vec_ref[5:6, 0:D]
        be1 = vec_ref[6:7, 0:D]
        g2 = vec_ref[7:8, 0:D]
        be2 = vec_ref[8:9, 0:D]
        b1 = vec_ref[9:10, :]

        # ---- in-projections (1/sqrt(head_dim) pre-folded into wq / bq) -----
        q = (jnp.dot(qs, wq, preferred_element_type=f32) + bq).astype(cdt)   # (RQ, D)
        k = (jnp.dot(ks, wk, preferred_element_type=f32) + bk).astype(cdt)   # (RK, D)
        v = (jnp.dot(vs, wv, preferred_element_type=f32) + bv).astype(cdt)   # (RK, D)

        # ---- blocked multi-head attention (no per-head loop, all 2-D) ------
        hm = hm_ref[...]                                   # (CK, D) bf16 head mask
        kb = jnp.concatenate([k] * nhead, axis=0) * hm     # (CK, D)
        vb = jnp.concatenate([v] * nhead, axis=0) * hm     # (CK, D)

        # Scores for every (head, batch) group in one MXU push: (RQ, CK)
        s = jax.lax.dot_general(q, kb, (((1,), (1,)), ((), ())),
                                preferred_element_type=f32)
        s = s + sbg_ref[0:RQ, :]                 # additive cross-batch mask (0 / -1e30)
        m = jnp.max(s, axis=-1, keepdims=True)
        e = jnp.exp(s - m)                       # masked columns underflow to exactly 0

        # Per-(head, batch) group softmax denominator via block-diag matmul.
        denom = jnp.dot(e.astype(cdt), bd_ref[...], preferred_element_type=f32)
        denom = denom + sbg_ref[RQ:2 * RQ, :]    # +1 only on fully-masked (cross-batch) groups
        p = e * pl.reciprocal(denom, approx=True)

        # Context: heads land directly in their output columns (vb is head-masked).
        ctx = jnp.dot(p.astype(cdt), vb, preferred_element_type=f32)          # (RQ, D)
        attn = jnp.dot(ctx.astype(cdt), wo, preferred_element_type=f32) + bo

        # ---- residual 1 + LayerNorm 1 (f32 on the VPU) ----------------------
        x1 = x + attn
        mu1 = jnp.mean(x1, axis=-1, keepdims=True)
        var1 = jnp.mean((x1 - mu1) ** 2, axis=-1, keepdims=True)
        x2 = (x1 - mu1) * jax.lax.rsqrt(var1 + eps) * g1 + be1

        # ---- feed forward (Linear -> ReLU -> Linear); dropout == identity ---
        h1 = jnp.dot(x2.astype(cdt), w1_ref[...], preferred_element_type=f32) + b1
        h1 = jnp.maximum(h1, 0.0)
        ff = jnp.dot(h1.astype(cdt), w2, preferred_element_type=f32) + b2

        # ---- residual 2 + LayerNorm 2 ---------------------------------------
        x3 = x1 + ff
        mu2 = jnp.mean(x3, axis=-1, keepdims=True)
        var2 = jnp.mean((x3 - mu2) ** 2, axis=-1, keepdims=True)
        y = (x3 - mu2) * jax.lax.rsqrt(var2 + eps) * g2 + be2

        out_ref[...] = y.astype(out_ref.dtype)

    return kernel


# --------------------- precomputed (compile-time) constants -------------------
@functools.lru_cache(maxsize=None)
def _build_constants(bb, sq, sk, nhead, head_dim):
    """Masks for one batch-block of bb elements; blocked column j = h*(bb*sk)+b*sk+kk."""
    rq, rk = bb * sq, bb * sk
    ck = nhead * rk
    d = nhead * head_dim
    j = np.arange(ck)
    col_head = j // rk
    col_batch = (j // sk) % bb
    row_batch = np.arange(rq) // sq
    valid = row_batch[:, None] == col_batch[None, :]
    score_bias = np.where(valid, 0.0, -1e30).astype(np.float32)     # (rq, ck)
    denom_guard = np.where(valid, 0.0, 1.0).astype(np.float32)      # (rq, ck)
    sbg = np.concatenate([score_bias, denom_guard], axis=0)         # (2*rq, ck)
    feat = np.arange(d)
    head_mask = (col_head[:, None] == feat[None, :] // head_dim).astype(np.float32)  # (ck, d)
    grp = j // sk
    bd = (grp[:, None] == grp[None, :]).astype(np.float32)          # (ck, ck)
    return sbg, head_mask, bd


# --------------------- one-time parameter packing -----------------------------
def pack_params(p, nhead):
    """16 parameter tensors -> 3 lane/sublane-aligned slabs (done once)."""
    d = p["wqT"].shape[0]
    ff = p["w1T"].shape[1]
    scale = 1.0 / math.sqrt(d // nhead)
    wn = jnp.concatenate(
        [p["wqT"] * scale, p["wkT"], p["wvT"], p["woT"], p["w2T"]],
        axis=0).astype(MXU_DTYPE)                                   # (4*D + FF, D)
    w1 = p["w1T"].astype(MXU_DTYPE)                                 # (D, FF)
    vec = jnp.zeros((10, ff), jnp.float32)
    vec = vec.at[0:9, 0:d].set(
        jnp.concatenate([p["bq"] * scale, p["bk"], p["bv"], p["bo"], p["b2"],
                         p["g1"], p["be1"], p["g2"], p["be2"]], axis=0))
    vec = vec.at[9:10, :].set(p["b1"])
    return {"wn": wn, "w1": w1, "vec": vec}


# ------------------------------- wrapper -------------------------------------
def _pick_block_batch(batch, sq, target_rows=128):
    bb = max(1, min(batch, target_rows // max(sq, 1)))
    while batch % bb:
        bb -= 1
    return bb


def spatial_transformer_layer(x, query, key, value, packed, nhead=NHEAD):
    """x, query: [B, SQ, D]; key, value: [B, SK, D] -> [B, SQ, D].

    Batch elements are independent: stack timesteps / layer invocations along
    the batch axis to amortize the weight DMA and fill the MXU; batch blocks
    are sharded across TensorCores via the "parallel" grid axis.
    """
    batch, sq, d = x.shape
    sk = key.shape[1]
    ff = packed["w1"].shape[1]

    bb = _pick_block_batch(batch, sq)
    nblk = batch // bb
    rq, rk = bb * sq, bb * sk
    ck = nhead * rk
    rows = 2 * rq + 2 * rk
    assert rq % 8 == 0 and rk % 8 == 0, "block rows must be sublane aligned"

    # Activation slab: per block, rows = [x | query | key | value].
    act = jnp.concatenate(
        [x.reshape(nblk, rq, d).astype(jnp.float32),
         query.reshape(nblk, rq, d).astype(jnp.float32),
         key.reshape(nblk, rk, d).astype(jnp.float32),
         value.reshape(nblk, rk, d).astype(jnp.float32)],
        axis=1).reshape(nblk * rows, d)

    sbg_np, hm_np, bd_np = _build_constants(bb, sq, sk, nhead, d // nhead)
    sbg = jnp.asarray(sbg_np)                       # (2*rq, ck) f32
    hm = jnp.asarray(hm_np, dtype=MXU_DTYPE)        # (ck, d)
    bd = jnp.asarray(bd_np, dtype=MXU_DTYPE)        # (ck, ck)

    kernel = _make_kernel(RQ=rq, RK=rk, CK=ck, D=d, FF=ff, nhead=nhead, eps=LN_EPS)

    def const2d(arr):
        return pl.BlockSpec(arr.shape, lambda i: (0, 0))

    out = pl.pallas_call(
        kernel,
        out_shape=jax.ShapeDtypeStruct((nblk * rq, d), jnp.float32),
        grid=(nblk,),
        in_specs=[
            pl.BlockSpec((rows, d), lambda i: (i, 0)),   # per-block activations
            const2d(packed["wn"]),
            const2d(packed["w1"]),
            const2d(packed["vec"]),
            const2d(sbg),
            const2d(hm),
            const2d(bd),
        ],
        out_specs=pl.BlockSpec((rq, d), lambda i: (i, 0)),
        compiler_params=pltpu.CompilerParams(
            dimension_semantics=("parallel",)),
    )(act, packed["wn"], packed["w1"], packed["vec"], sbg, hm, bd)

    return out.reshape(batch, sq, d)


# --------------------------- pure-JAX reference -------------------------------
def reference(x, query, key, value, p):
    def one(xb, qb, kb, vb):
        q = qb @ p["wqT"] + p["bq"]
        k = kb @ p["wkT"] + p["bk"]
        v = vb @ p["wvT"] + p["bv"]
        scale = 1.0 / math.sqrt(HEAD_DIM)
        outs = []
        for h in range(NHEAD):
            lo, hi = h * HEAD_DIM, (h + 1) * HEAD_DIM
            s = (q[:, lo:hi] * scale) @ k[:, lo:hi].T
            pmat = jax.nn.softmax(s, axis=-1)
            outs.append(pmat @ v[:, lo:hi])
        attn = jnp.concatenate(outs, axis=-1) @ p["woT"] + p["bo"]
        x1 = xb + attn
        mu = jnp.mean(x1, -1, keepdims=True)
        var = jnp.mean((x1 - mu) ** 2, -1, keepdims=True)
        x2 = (x1 - mu) * jax.lax.rsqrt(var + LN_EPS) * p["g1"] + p["be1"]
        ff = jnp.maximum(x2 @ p["w1T"] + p["b1"], 0.0) @ p["w2T"] + p["b2"]
        x3 = x1 + ff
        mu2 = jnp.mean(x3, -1, keepdims=True)
        var2 = jnp.mean((x3 - mu2) ** 2, -1, keepdims=True)
        return (x3 - mu2) * jax.lax.rsqrt(var2 + LN_EPS) * p["g2"] + p["be2"]
    return jax.vmap(one)(x, query, key, value)


# --------------------------------- main ---------------------------------------
if __name__ == "__main__":
    root = jax.random.PRNGKey(0)
    keys = jax.random.split(root, 16)

    def init(k, shape, scale=0.1):
        return jax.random.normal(k, shape, jnp.float32) * scale

    # Parameters (shapes match nn.MultiheadAttention / Linear(D,4D)/Linear(4D,D)/LayerNorm(D)).
    # Stored pre-transposed so the kernel computes x @ W^T as x @ (stored matrix).
    params = {
        "wqT": init(keys[0], (D, D)),   "bq": init(keys[1], (1, D)),
        "wkT": init(keys[2], (D, D)),   "bk": init(keys[3], (1, D)),
        "wvT": init(keys[4], (D, D)),   "bv": init(keys[5], (1, D)),
        "woT": init(keys[6], (D, D)),   "bo": init(keys[7], (1, D)),
        "w1T": init(keys[8], (D, FF)),  "b1": init(keys[9], (1, FF)),
        "w2T": init(keys[10], (FF, D)), "b2": init(keys[11], (1, D)),
        "g1": jnp.ones((1, D), jnp.float32),  "be1": jnp.zeros((1, D), jnp.float32),
        "g2": jnp.ones((1, D), jnp.float32),  "be2": jnp.zeros((1, D), jnp.float32),
    }

    x = init(keys[12], (B, SQ, D), scale=1.0)
    query = init(keys[13], (B, SQ, D), scale=1.0)
    key = init(keys[14], (B, SK, D), scale=1.0)
    spatial_values = init(keys[15], (B, SK, D), scale=1.0)

    packed = pack_params(params, NHEAD)            # one-time parameter packing
    fwd = jax.jit(spatial_transformer_layer)
    out = jax.block_until_ready(fwd(x, query, key, spatial_values, packed))

    ref = reference(x, query, key, spatial_values, params)
    err = float(jnp.max(jnp.abs(out - ref)))
    # Tolerance covers bf16 MXU operands (f32 accumulate) + the EUP approximate
    # reciprocal used for the softmax denominator. With MXU_DTYPE=float32 the
    # kernel matches the f32 reference to ~1e-3 (approx reciprocal only).
    tol = 2e-2 if MXU_DTYPE == jnp.bfloat16 else 1e-3
    assert err < tol, f"mismatch vs reference: max abs err {err} (tol {tol})"

    print("KERNEL_OK")
</pallas_src>

<mosaic_0001>
module attributes {stable_mosaic.version = 11 : i64} {
  func.func @kernel(%arg0: i32, %arg1: memref<64x32xf32, #tpu.memory_space<vmem>>, %arg2: memref<256x32xbf16, #tpu.memory_space<vmem>>, %arg3: memref<32x128xbf16, #tpu.memory_space<vmem>>, %arg4: memref<10x128xf32, #tpu.memory_space<vmem>>, %arg5: memref<32x64xf32, #tpu.memory_space<vmem>>, %arg6: memref<64x32xbf16, #tpu.memory_space<vmem>>, %arg7: memref<64x64xbf16, #tpu.memory_space<vmem>>, %arg8: memref<16x32xf32, #tpu.memory_space<vmem>>) attributes {dimension_semantics = [#tpu.dimension_semantics<parallel>], iteration_bounds = array<i64: 1>, scalar_prefetch = 0 : i64, scratch_operands = 0 : i64, tpu.core_type = #tpu.core_type<tc>, window_params = [{transform_indices = @transform_0, window_bounds = array<i64: 64, 32>}, {pipeline_mode = #tpu.pipeline_mode<synchronous>, transform_indices = @transform_1, window_bounds = array<i64: 256, 32>}, {pipeline_mode = #tpu.pipeline_mode<synchronous>, transform_indices = @transform_2, window_bounds = array<i64: 32, 128>}, {pipeline_mode = #tpu.pipeline_mode<synchronous>, transform_indices = @transform_3, window_bounds = array<i64: 10, 128>}, {pipeline_mode = #tpu.pipeline_mode<synchronous>, transform_indices = @transform_4, window_bounds = array<i64: 32, 64>}, {pipeline_mode = #tpu.pipeline_mode<synchronous>, transform_indices = @transform_5, window_bounds = array<i64: 64, 32>}, {pipeline_mode = #tpu.pipeline_mode<synchronous>, transform_indices = @transform_6, window_bounds = array<i64: 64, 64>}, {transform_indices = @transform_7, window_bounds = array<i64: 16, 32>}]} {
    %c0 = arith.constant 0 : index
    %c0_0 = arith.constant 0 : index
    %0 = vector.load %arg1[%c0, %c0_0] : memref<64x32xf32, #tpu.memory_space<vmem>>, vector<16x32xf32>
    %c16 = arith.constant 16 : index
    %c0_1 = arith.constant 0 : index
    %1 = vector.load %arg1[%c16, %c0_1] : memref<64x32xf32, #tpu.memory_space<vmem>>, vector<16x32xf32>
    %2 = arith.truncf %1 : vector<16x32xf32> to vector<16x32xbf16>
    %c32 = arith.constant 32 : index
    %c0_2 = arith.constant 0 : index
    %3 = vector.load %arg1[%c32, %c0_2] : memref<64x32xf32, #tpu.memory_space<vmem>>, vector<16x32xf32>
    %4 = arith.truncf %3 : vector<16x32xf32> to vector<16x32xbf16>
    %c48 = arith.constant 48 : index
    %c0_3 = arith.constant 0 : index
    %5 = vector.load %arg1[%c48, %c0_3] : memref<64x32xf32, #tpu.memory_space<vmem>>, vector<16x32xf32>
    %6 = arith.truncf %5 : vector<16x32xf32> to vector<16x32xbf16>
    %c0_4 = arith.constant 0 : index
    %c0_5 = arith.constant 0 : index
    %7 = vector.load %arg2[%c0_4, %c0_5] : memref<256x32xbf16, #tpu.memory_space<vmem>>, vector<32x32xbf16>
    %c32_6 = arith.constant 32 : index
    %c0_7 = arith.constant 0 : index
    %8 = vector.load %arg2[%c32_6, %c0_7] : memref<256x32xbf16, #tpu.memory_space<vmem>>, vector<32x32xbf16>
    %c64 = arith.constant 64 : index
    %c0_8 = arith.constant 0 : index
    %9 = vector.load %arg2[%c64, %c0_8] : memref<256x32xbf16, #tpu.memory_space<vmem>>, vector<32x32xbf16>
    %c96 = arith.constant 96 : index
    %c0_9 = arith.constant 0 : index
    %10 = vector.load %arg2[%c96, %c0_9] : memref<256x32xbf16, #tpu.memory_space<vmem>>, vector<32x32xbf16>
    %c128 = arith.constant 128 : index
    %c0_10 = arith.constant 0 : index
    %11 = vector.load %arg2[%c128, %c0_10] : memref<256x32xbf16, #tpu.memory_space<vmem>>, vector<128x32xbf16>
    %c0_11 = arith.constant 0 : index
    %c0_12 = arith.constant 0 : index
    %12 = vector.load %arg4[%c0_11, %c0_12] : memref<10x128xf32, #tpu.memory_space<vmem>>, vector<1x32xf32>
    %c1 = arith.constant 1 : index
    %c0_13 = arith.constant 0 : index
    %13 = vector.load %arg4[%c1, %c0_13] : memref<10x128xf32, #tpu.memory_space<vmem>>, vector<1x32xf32>
    %c2 = arith.constant 2 : index
    %c0_14 = arith.constant 0 : index
    %14 = vector.load %arg4[%c2, %c0_14] : memref<10x128xf32, #tpu.memory_space<vmem>>, vector<1x32xf32>
    %c3 = arith.constant 3 : index
    %c0_15 = arith.constant 0 : index
    %15 = vector.load %arg4[%c3, %c0_15] : memref<10x128xf32, #tpu.memory_space<vmem>>, vector<1x32xf32>
    %c4 = arith.constant 4 : index
    %c0_16 = arith.constant 0 : index
    %16 = vector.load %arg4[%c4, %c0_16] : memref<10x128xf32, #tpu.memory_space<vmem>>, vector<1x32xf32>
    %c5 = arith.constant 5 : index
    %c0_17 = arith.constant 0 : index
    %17 = vector.load %arg4[%c5, %c0_17] : memref<10x128xf32, #tpu.memory_space<vmem>>, vector<1x32xf32>
    %c6 = arith.constant 6 : index
    %c0_18 = arith.constant 0 : index
    %18 = vector.load %arg4[%c6, %c0_18] : memref<10x128xf32, #tpu.memory_space<vmem>>, vector<1x32xf32>
    %c7 = arith.constant 7 : index
    %c0_19 = arith.constant 0 : index
    %19 = vector.load %arg4[%c7, %c0_19] : memref<10x128xf32, #tpu.memory_space<vmem>>, vector<1x32xf32>
    %c8 = arith.constant 8 : index
    %c0_20 = arith.constant 0 : index
    %20 = vector.load %arg4[%c8, %c0_20] : memref<10x128xf32, #tpu.memory_space<vmem>>, vector<1x32xf32>
    %c9 = arith.constant 9 : index
    %c0_21 = arith.constant 0 : index
    %21 = vector.load %arg4[%c9, %c0_21] : memref<10x128xf32, #tpu.memory_space<vmem>>, vector<1x128xf32>
    %cst = arith.constant dense<0.000000e+00> : vector<16x32xf32>
    %22 = tpu.matmul %2, %7, %cst {dimension_numbers = #tpu.dot_dimension_numbers<[1], [0], [0], [1], [0, 0, 1, 1], [], []>} : vector<16x32xbf16>, vector<32x32xbf16>, vector<16x32xf32> -> vector<16x32xf32>
    %23 = vector.broadcast %12 : vector<1x32xf32> to vector<16x32xf32>
    %24 = arith.addf %22, %23 : vector<16x32xf32>
    %25 = arith.truncf %24 : vector<16x32xf32> to vector<16x32xbf16>
    %cst_22 = arith.constant dense<0.000000e+00> : vector<16x32xf32>
    %26 = tpu.matmul %4, %8, %cst_22 {dimension_numbers = #tpu.dot_dimension_numbers<[1], [0], [0], [1], [0, 0, 1, 1], [], []>} : vector<16x32xbf16>, vector<32x32xbf16>, vector<16x32xf32> -> vector<16x32xf32>
    %27 = vector.broadcast %13 : vector<1x32xf32> to vector<16x32xf32>
    %28 = arith.addf %26, %27 : vector<16x32xf32>
    %29 = arith.truncf %28 : vector<16x32xf32> to vector<16x32xbf16>
    %cst_23 = arith.constant dense<0.000000e+00> : vector<16x32xf32>
    %30 = tpu.matmul %6, %9, %cst_23 {dimension_numbers = #tpu.dot_dimension_numbers<[1], [0], [0], [1], [0, 0, 1, 1], [], []>} : vector<16x32xbf16>, vector<32x32xbf16>, vector<16x32xf32> -> vector<16x32xf32>
    %31 = vector.broadcast %14 : vector<1x32xf32> to vector<16x32xf32>
    %32 = arith.addf %30, %31 : vector<16x32xf32>
    %33 = arith.truncf %32 : vector<16x32xf32> to vector<16x32xbf16>
    %c0_24 = arith.constant 0 : index
    %c0_25 = arith.constant 0 : index
    %34 = vector.load %arg6[%c0_24, %c0_25] : memref<64x32xbf16, #tpu.memory_space<vmem>>, vector<64x32xbf16>
    %35 = tpu.concatenate %29, %29, %29, %29 in 0 : vector<16x32xbf16>, vector<16x32xbf16>, vector<16x32xbf16>, vector<16x32xbf16> -> vector<64x32xbf16>
    %36 = arith.mulf %35, %34 : vector<64x32xbf16>
    %37 = tpu.concatenate %33, %33, %33, %33 in 0 : vector<16x32xbf16>, vector<16x32xbf16>, vector<16x32xbf16>, vector<16x32xbf16> -> vector<64x32xbf16>
    %38 = arith.mulf %37, %34 : vector<64x32xbf16>
    %cst_26 = arith.constant dense<0.000000e+00> : vector<16x64xf32>
    %39 = tpu.matmul %25, %36, %cst_26 {dimension_numbers = #tpu.dot_dimension_numbers<[1], [1], [0], [0], [0, 0, 1, 0], [], []>} : vector<16x32xbf16>, vector<64x32xbf16>, vector<16x64xf32> -> vector<16x64xf32>
    %c0_27 = arith.constant 0 : index
    %c0_28 = arith.constant 0 : index
    %40 = vector.load %arg5[%c0_27, %c0_28] : memref<32x64xf32, #tpu.memory_space<vmem>>, vector<16x64xf32>
    %41 = arith.addf %39, %40 : vector<16x64xf32>
    %cst_29 = arith.constant dense<0xFF800000> : vector<16xf32>
    %42 = vector.multi_reduction <maximumf>, %41, %cst_29 [1] : vector<16x64xf32> to vector<16xf32>
    %43 = vector.shape_cast %42 : vector<16xf32> to vector<16x1xf32>
    %44 = vector.broadcast %43 : vector<16x1xf32> to vector<16x64xf32>
    %45 = arith.subf %41, %44 : vector<16x64xf32>
    %46 = math.exp %45 : vector<16x64xf32>
    %47 = arith.truncf %46 : vector<16x64xf32> to vector<16x64xbf16>
    %c0_30 = arith.constant 0 : index
    %c0_31 = arith.constant 0 : index
    %48 = vector.load %arg7[%c0_30, %c0_31] : memref<64x64xbf16, #tpu.memory_space<vmem>>, vector<64x64xbf16>
    %cst_32 = arith.constant dense<0.000000e+00> : vector<16x64xf32>
    %49 = tpu.matmul %47, %48, %cst_32 {dimension_numbers = #tpu.dot_dimension_numbers<[1], [0], [0], [1], [0, 0, 1, 1], [], []>} : vector<16x64xbf16>, vector<64x64xbf16>, vector<16x64xf32> -> vector<16x64xf32>
    %c16_33 = arith.constant 16 : index
    %c0_34 = arith.constant 0 : index
    %50 = vector.load %arg5[%c16_33, %c0_34] : memref<32x64xf32, #tpu.memory_space<vmem>>, vector<16x64xf32>
    %51 = arith.addf %49, %50 : vector<16x64xf32>
    %52 = tpu.reciprocal %51 {approx = true} : vector<16x64xf32> -> vector<16x64xf32>
    %53 = arith.mulf %46, %52 : vector<16x64xf32>
    %54 = arith.truncf %53 : vector<16x64xf32> to vector<16x64xbf16>
    %cst_35 = arith.constant dense<0.000000e+00> : vector<16x32xf32>
    %55 = tpu.matmul %54, %38, %cst_35 {dimension_numbers = #tpu.dot_dimension_numbers<[1], [0], [0], [1], [0, 0, 1, 1], [], []>} : vector<16x64xbf16>, vector<64x32xbf16>, vector<16x32xf32> -> vector<16x32xf32>
    %56 = arith.truncf %55 : vector<16x32xf32> to vector<16x32xbf16>
    %cst_36 = arith.constant dense<0.000000e+00> : vector<16x32xf32>
    %57 = tpu.matmul %56, %10, %cst_36 {dimension_numbers = #tpu.dot_dimension_numbers<[1], [0], [0], [1], [0, 0, 1, 1], [], []>} : vector<16x32xbf16>, vector<32x32xbf16>, vector<16x32xf32> -> vector<16x32xf32>
    %58 = vector.broadcast %15 : vector<1x32xf32> to vector<16x32xf32>
    %59 = arith.addf %57, %58 : vector<16x32xf32>
    %60 = arith.addf %0, %59 : vector<16x32xf32>
    %cst_37 = arith.constant dense<0.000000e+00> : vector<16xf32>
    %61 = vector.multi_reduction <add>, %60, %cst_37 [1] : vector<16x32xf32> to vector<16xf32>
    %62 = vector.shape_cast %61 : vector<16xf32> to vector<16x1xf32>
    %cst_38 = arith.constant 3.200000e+01 : f32
    %63 = vector.broadcast %cst_38 : f32 to vector<16x1xf32>
    %64 = arith.divf %62, %63 : vector<16x1xf32>
    %65 = vector.broadcast %64 : vector<16x1xf32> to vector<16x32xf32>
    %66 = arith.subf %60, %65 : vector<16x32xf32>
    %67 = arith.mulf %66, %66 : vector<16x32xf32>
    %cst_39 = arith.constant dense<0.000000e+00> : vector<16xf32>
    %68 = vector.multi_reduction <add>, %67, %cst_39 [1] : vector<16x32xf32> to vector<16xf32>
    %69 = vector.shape_cast %68 : vector<16xf32> to vector<16x1xf32>
    %cst_40 = arith.constant 3.200000e+01 : f32
    %70 = vector.broadcast %cst_40 : f32 to vector<16x1xf32>
    %71 = arith.divf %69, %70 : vector<16x1xf32>
    %72 = vector.broadcast %64 : vector<16x1xf32> to vector<16x32xf32>
    %73 = arith.subf %60, %72 : vector<16x32xf32>
    %cst_41 = arith.constant 9.99999974E-6 : f32
    %74 = vector.broadcast %cst_41 : f32 to vector<16x1xf32>
    %75 = arith.addf %71, %74 : vector<16x1xf32>
    %76 = math.rsqrt %75 : vector<16x1xf32>
    %77 = vector.broadcast %76 : vector<16x1xf32> to vector<16x32xf32>
    %78 = arith.mulf %73, %77 : vector<16x32xf32>
    %79 = vector.broadcast %17 : vector<1x32xf32> to vector<16x32xf32>
    %80 = arith.mulf %78, %79 : vector<16x32xf32>
    %81 = vector.broadcast %18 : vector<1x32xf32> to vector<16x32xf32>
    %82 = arith.addf %80, %81 : vector<16x32xf32>
    %83 = arith.truncf %82 : vector<16x32xf32> to vector<16x32xbf16>
    %c0_42 = arith.constant 0 : index
    %c0_43 = arith.constant 0 : index
    %84 = vector.load %arg3[%c0_42, %c0_43] : memref<32x128xbf16, #tpu.memory_space<vmem>>, vector<32x128xbf16>
    %cst_44 = arith.constant dense<0.000000e+00> : vector<16x128xf32>
    %85 = tpu.matmul %83, %84, %cst_44 {dimension_numbers = #tpu.dot_dimension_numbers<[1], [0], [0], [1], [0, 0, 1, 1], [], []>} : vector<16x32xbf16>, vector<32x128xbf16>, vector<16x128xf32> -> vector<16x128xf32>
    %86 = vector.broadcast %21 : vector<1x128xf32> to vector<16x128xf32>
    %87 = arith.addf %85, %86 : vector<16x128xf32>
    %cst_45 = arith.constant 0.000000e+00 : f32
    %88 = vector.broadcast %cst_45 : f32 to vector<16x128xf32>
    %89 = arith.maximumf %87, %88 : vector<16x128xf32>
    %90 = arith.truncf %89 : vector<16x128xf32> to vector<16x128xbf16>
    %cst_46 = arith.constant dense<0.000000e+00> : vector<16x32xf32>
    %91 = tpu.matmul %90, %11, %cst_46 {dimension_numbers = #tpu.dot_dimension_numbers<[1], [0], [0], [1], [0, 0, 1, 1], [], []>} : vector<16x128xbf16>, vector<128x32xbf16>, vector<16x32xf32> -> vector<16x32xf32>
    %92 = vector.broadcast %16 : vector<1x32xf32> to vector<16x32xf32>
    %93 = arith.addf %91, %92 : vector<16x32xf32>
    %94 = arith.addf %60, %93 : vector<16x32xf32>
    %cst_47 = arith.constant dense<0.000000e+00> : vector<16xf32>
    %95 = vector.multi_reduction <add>, %94, %cst_47 [1] : vector<16x32xf32> to vector<16xf32>
    %96 = vector.shape_cast %95 : vector<16xf32> to vector<16x1xf32>
    %cst_48 = arith.constant 3.200000e+01 : f32
    %97 = vector.broadcast %cst_48 : f32 to vector<16x1xf32>
    %98 = arith.divf %96, %97 : vector<16x1xf32>
    %99 = vector.broadcast %98 : vector<16x1xf32> to vector<16x32xf32>
    %100 = arith.subf %94, %99 : vector<16x32xf32>
    %101 = arith.mulf %100, %100 : vector<16x32xf32>
    %cst_49 = arith.constant dense<0.000000e+00> : vector<16xf32>
    %102 = vector.multi_reduction <add>, %101, %cst_49 [1] : vector<16x32xf32> to vector<16xf32>
    %103 = vector.shape_cast %102 : vector<16xf32> to vector<16x1xf32>
    %cst_50 = arith.constant 3.200000e+01 : f32
    %104 = vector.broadcast %cst_50 : f32 to vector<16x1xf32>
    %105 = arith.divf %103, %104 : vector<16x1xf32>
    %106 = vector.broadcast %98 : vector<16x1xf32> to vector<16x32xf32>
    %107 = arith.subf %94, %106 : vector<16x32xf32>
    %cst_51 = arith.constant 9.99999974E-6 : f32
    %108 = vector.broadcast %cst_51 : f32 to vector<16x1xf32>
    %109 = arith.addf %105, %108 : vector<16x1xf32>
    %110 = math.rsqrt %109 : vector<16x1xf32>
    %111 = vector.broadcast %110 : vector<16x1xf32> to vector<16x32xf32>
    %112 = arith.mulf %107, %111 : vector<16x32xf32>
    %113 = vector.broadcast %19 : vector<1x32xf32> to vector<16x32xf32>
    %114 = arith.mulf %112, %113 : vector<16x32xf32>
    %115 = vector.broadcast %20 : vector<1x32xf32> to vector<16x32xf32>
    %116 = arith.addf %114, %115 : vector<16x32xf32>
    %c0_52 = arith.constant 0 : index
    %c0_53 = arith.constant 0 : index
    %117 = vector.load %arg8[%c0_52, %c0_53] : memref<16x32xf32, #tpu.memory_space<vmem>>, vector<16x32xf32>
    tpu.vector_store %arg8[%c0_52, %c0_53], %116 {strides = array<i32>} : memref<16x32xf32, #tpu.memory_space<vmem>>, vector<16x32xf32>,
    return
  }
  func.func @transform_0(%arg0: i32) -> (i32, i32) {
    %c0_i32 = arith.constant 0 : i32
    %c0_i32_0 = arith.constant 0 : i32
    return %arg0, %c0_i32 : i32, i32
  }
  func.func @transform_1(%arg0: i32) -> (i32, i32) {
    %c0_i32 = arith.constant 0 : i32
    %c0_i32_0 = arith.constant 0 : i32
    %c0_i32_1 = arith.constant 0 : i32
    return %c0_i32, %c0_i32_0 : i32, i32
  }
  func.func @transform_2(%arg0: i32) -> (i32, i32) {
    %c0_i32 = arith.constant 0 : i32
    %c0_i32_0 = arith.constant 0 : i32
    %c0_i32_1 = arith.constant 0 : i32
    return %c0_i32, %c0_i32_0 : i32, i32
  }
  func.func @transform_3(%arg0: i32) -> (i32, i32) {
    %c0_i32 = arith.constant 0 : i32
    %c0_i32_0 = arith.constant 0 : i32
    %c0_i32_1 = arith.constant 0 : i32
    return %c0_i32, %c0_i32_0 : i32, i32
  }
  func.func @transform_4(%arg0: i32) -> (i32, i32) {
    %c0_i32 = arith.constant 0 : i32
    %c0_i32_0 = arith.constant 0 : i32
    %c0_i32_1 = arith.constant 0 : i32
    return %c0_i32, %c0_i32_0 : i32, i32
  }
  func.func @transform_5(%arg0: i32) -> (i32, i32) {
    %c0_i32 = arith.constant 0 : i32
    %c0_i32_0 = arith.constant 0 : i32
    %c0_i32_1 = arith.constant 0 : i32
    return %c0_i32, %c0_i32_0 : i32, i32
  }
  func.func @transform_6(%arg0: i32) -> (i32, i32) {
    %c0_i32 = arith.constant 0 : i32
    %c0_i32_0 = arith.constant 0 : i32
    %c0_i32_1 = arith.constant 0 : i32
    return %c0_i32, %c0_i32_0 : i32, i32
  }
  func.func @transform_7(%arg0: i32) -> (i32, i32) {
    %c0_i32 = arith.constant 0 : i32
    %c0_i32_0 = arith.constant 0 : i32
    return %arg0, %c0_i32 : i32, i32
  }
}

</mosaic_0001>

<bundles_post_ra>
// kernel: spatial_transformer_layer.1
= control target key start
LH: loop header
LB: loop body
LE: loop exit
PB: predicated region body
PF: predicated region fallthrough
CT: control target
= control target key end

     0   :  { %v1075_v1 = vmov 0.0   ;;  %vm1076_vm0 = vmmov 0   ;;  %vm97_vm1 = vcmask 261120   ;;  %s1374_s0 = inlined_call_operand.vmem [shape: f32[64,32], index: 0, kind: input, shape index: {}]   ;;  %s1375_s1 = inlined_call_operand.vmem [shape: bf16[256,32], index: 1, kind: input, shape index: {}]   ;;  %s1376_s2 = inlined_call_operand.vmem [shape: bf16[32,128], index: 2, kind: input, shape index: {}]   ;;  %s1377_s3 = inlined_call_operand.vmem [shape: f32[10,128], index: 3, kind: input, shape index: {}]   ;;  %s1378_s4 = inlined_call_operand.vmem [shape: f32[32,64], index: 4, kind: input, shape index: {}]   ;;  %s1379_s5 = inlined_call_operand.vmem [shape: bf16[64,32], index: 5, kind: input, shape index: {}]   ;;  %s1380_s6 = inlined_call_operand.vmem [shape: bf16[64,64], index: 6, kind: input, shape index: {}]   ;;  %s1381_s7 = inlined_call_operand.hbm [shape: f32[16,32], index: 7, kind: output, shape index: {}]  }
   0x1   :  { %v1009_v0 = vld [vmem:[%s1375_s1] sm:$0xff]   ;;  %908 = vmatprep.subr.bf16.mxu0 %v1075_v1  ;;  %v1010_v2 = vld [vmem:[%s1375_s1 + $0x8] sm:$0xff]   ;;  %932 = vmatprep.subr.bf16.mxu1 %v1075_v1  ;;  %v30_v3 = vld [vmem:[%s1374_s0 + $0x10] sm:$0xff] }
   0x2   :  { %909 = vmatpush3.bf16.msra.mxu0 %v1009_v0  ;;  %912 = vmatprep.mubr.msk.bf16.mxu0 %vm1076_vm0, %v1075_v1  ;;  %v31_v4 = vld [vmem:[%s1374_s0 + $0x18] sm:$0xff]  ;;  %v1011_v6 = vld [vmem:[%s1375_s1 + $0x10] sm:$0xff]   ;;  %v33_v8 = vld [vmem:[%s1374_s0 + $0x20] sm:$0xff] }
   0x3   :  { %910 = vmatprep.subr.bf16.mxu0 %v1075_v1  ;;  %940 = vmatprep.mubr.msk.bf16.mxu1 %vm1076_vm0, %v1075_v1  ;;  %v32_v5 = vpack.c.bf16 %v31_v4, %v30_v3  ;;  %v1012_v7 = vld [vmem:[%s1375_s1 + $0x18] sm:$0xff]   ;;  %v34_v9 = vld [vmem:[%s1374_s0 + $0x28] sm:$0xff] }
   0x4   :  { %v35_v10 = vpack.c.bf16 %v34_v9, %v33_v8 }
   0x6   :  { %911 = vmatpush3.bf16.msra.mxu0 %v1010_v2 }
   0x7   :  { %916 = vmatprep.subr.bf16.mxu0 %v1075_v1 }
   0x9   :  { %913 = vmatmul.mubr.msk.bf16.vlgmr.msra.gmra.mrb[0].mxu0 %vm97_vm1, %v32_v5 }
   0xa   :  { %917 = vmatpush3.bf16.msra.mxu0 %v1011_v6  ;;  %920 = vmatprep.mubr.msk.bf16.mxu0 %vm1076_vm0, %v1075_v1 }
   0xb   :  { %918 = vmatprep.subr.bf16.mxu0 %v1075_v1 }
   0xe   :  { %919 = vmatpush3.bf16.msra.mxu0 %v1012_v7 }
   0xf   :  { %924 = vmatprep.subr.bf16.mxu0 %v1075_v1 }
  0x11   :  { %921 = vmatmul.mubr.msk.bf16.vlgmr.msra.gmra.mrb[4].mxu0 %vm97_vm1, %v35_v10 }
  0x12   :  { %928 = vmatprep.mubr.msk.bf16.mxu0 %vm1076_vm0, %v1075_v1 }
  0x13   :  { %12 = vsyncpa [#allocation3], 0  ;;  %v825_v11 = vld [vmem:[%s1377_s3] ss:$0 sm:$0xff]  ;;  %v829_v19 = vld [vmem:[%s1377_s3 + $0x1] ss:$0 sm:$0xff] }
  0x14   :  { %v1169_v26 = vld [vmem:[%s1379_s5] sm:$0xff]   ;;  %v1176_v30 = vld [vmem:[%s1379_s5 + $0x8] sm:$0xff]   ;;  %v1184_v33 = vld [vmem:[%s1379_s5 + $0x10] sm:$0xff]   ;;  %vm363_vm2 = vcmask 523264   ;;  %s1077_s17 = smov [#allocation2]  }
  0x15   :  { %v1192_v36 = vld [vmem:[%s1379_s5 + $0x18] sm:$0xff]   ;;  %v1017_v39 = vld [vmem:[%s1375_s1 + $0x20] sm:$0xff]   ;;  %v1018_v40 = vld [vmem:[%s1375_s1 + $0x28] sm:$0xff]   ;;  %s814_s18 = sshll.u32 %s1077_s17, 4  ;;  %s815_s18 = int_to_ptr.vmem [resolvable:$true] %s814_s18 }
  0x16   :  { %925 = vmatpush3.bf16.msra.mxu0 %v1017_v39  ;;  %v36_v41 = vld [vmem:[%s1374_s0 + $0x30] sm:$0xff]  ;;  %v37_v42 = vld [vmem:[%s1374_s0 + $0x38] sm:$0xff]  ;;  %v305_v44 = vld [vmem:[%s1378_s4] sm:$0xff]  ;;  %s1051_s19 = scalar_lea.vmem %s815_s18, 256  ;;  %p1056_p1 = scmp.lt.s32.totalorder %s815_s18, %s815_s18 }
  0x17   :  { %926 = vmatprep.subr.bf16.mxu0 %v1075_v1  ;;  %v38_v43 = vpack.c.bf16 %v37_v42, %v36_v41  ;;  %v306_v46 = vld [vmem:[%s1378_s4 + $0x8] sm:$0xff]  ;;  %v1019_v54 = vld [vmem:[%s1380_s6] sm:$0xff]   ;;  %v1021_v56 = vld [vmem:[%s1380_s6 + $0x10] sm:$0xff]   ;;  %p1052_p0 = scmp.ne.s32.totalorder %s815_s18, %s1051_s19  ;;  %p1057_p2 = scmp.lt.s32.totalorder %s1051_s19, %s1051_s19 }
  0x18   :  { %v1020_v55 = vld [vmem:[%s1380_s6 + $0x8] sm:$0xff]   ;;  %v1022_v57 = vld [vmem:[%s1380_s6 + $0x18] sm:$0xff]   ;;  %v833_v58 = vld [vmem:[%s1377_s3 + $0x2] ss:$0 sm:$0xff] }
  0x19   :  { %v29_v41 = vld [vmem:[%s1374_s0 + $0x8] sm:$0xff]  ;;  %p1058_p3 = por %p1057_p2, %p1056_p1 }
  0x1a   :  { %927 = vmatpush3.bf16.msra.mxu0 %v1018_v40 }
  0x1b   :  { %944 = vmatprep.subr.bf16.mxu0 %v1075_v1  ;;  %p1059_p4 = pnand %p1058_p3, %p1052_p0 }
  0x1d   :  { %929 = vmatmul.mubr.msk.bf16.vlgmr.msra.gmra.mrb[8].mxu0 %vm97_vm1, %v38_v43 }
  0x1e   :  { %952 = vmatprep.mubr.msk.bf16.mxu0 %vm1076_vm0, %v1075_v1  ;;  %945 = vmatpush3.bf16.msra.mxu0 %v1019_v54 }
  0x1f   :  { %946 = vmatprep.subr.bf16.mxu0 %v1075_v1 }
  0x22   :  { %947 = vmatpush3.bf16.msra.mxu0 %v1020_v55 }
  0x23   :  { %948 = vmatprep.subr.bf16.mxu0 %v1075_v1 }
  0x26   :  { %949 = vmatpush3.bf16.msra.mxu0 %v1021_v56 }
  0x27   :  { %950 = vmatprep.subr.bf16.mxu0 %v1075_v1 }
  0x2a   :  { %951 = vmatpush3.bf16.msra.mxu0 %v1022_v57 }
  0x2b   :  { %956 = vmatprep.subr.bf16.mxu0 %v1075_v1 }
  0xdc   :  { %v135_v12 = vpop.f32.mrb[0].mxu0 }
  0xdd   :  { %v914_v13 = vpop.f32.mrb[1].mxu0  ;;  %v136_v15 = vadd.f32 %v825_v11, %v135_v12 }
  0xde   :  { %v138_v14 = vpop.f32.mrb[2].mxu0 }
  0xdf   :  { %v139_v16 = vadd.f32 %v825_v11, %v138_v14  ;;  %v915_v17 = vpop.f32.mrb[3].mxu0 }
  0xe0   :  { %v385_v17 = vld [vmem:[%s1378_s4 + $0x10] sm:$0xff] }
  0xe1   :  { %v142_v18 = vpack.c.bf16 %v139_v16, %v136_v15  ;;  %v1023_v16 = vld [vmem:[%s1375_s1 + $0x30] sm:$0xff]  }
  0xe4   :  { %v196_v20 = vpop.f32.mrb[4].mxu0 }
  0xe5   :  { %v922_v21 = vpop.f32.mrb[5].mxu0  ;;  %v197_v23 = vadd.f32 %v829_v19, %v196_v20 }
  0xe6   :  { %v199_v22 = vpop.f32.mrb[6].mxu0 }
  0xe7   :  { %v200_v24 = vadd.f32 %v829_v19, %v199_v22  ;;  %v923_v25 = vpop.f32.mrb[7].mxu0  ;;  %v386_v19 = vld [vmem:[%s1378_s4 + $0x18] sm:$0xff] }
  0xe9   :  { %v203_v27 = vpack.c.bf16 %v200_v24, %v197_v23 }
  0xeb   :  { %v297_v28 = vmul.bf16 %v1169_v26, %v203_v27  ;;  %v298_v31 = vmul.bf16 %v1176_v30, %v203_v27  ;;  %v299_v34 = vmul.bf16 %v1184_v33, %v203_v27  ;;  %v300_v37 = vmul.bf16 %v1192_v36, %v203_v27 }
  0xed   :  { %v311_v29 = vsel %vm97_vm1, %v297_v28, 0  ;;  %v314_v32 = vsel %vm97_vm1, %v298_v31, 0  ;;  %v317_v35 = vsel %vm97_vm1, %v299_v34, 0  ;;  %v320_v38 = vsel %vm97_vm1, %v300_v37, 0  ;;  %v28_v37 = vld [vmem:[%s1374_s0] sm:$0xff] }
  0xee   :  { %933 = vmatpush3.bf16.xpose.msra.mxu1 %v311_v29 }
  0xef   :  { %934 = vmatprep.subr.bf16.mxu1 %v1075_v1 }
  0xf0   :  { %v257_v59 = vpop.f32.mrb[8].mxu0 }
  0xf1   :  { %v258_v60 = vadd.f32 %v833_v58, %v257_v59  ;;  %v930_v61 = vpop.f32.mrb[9].mxu0  ;;  %v1025_v59 = vld [vmem:[%s1376_s2] sm:$0xff]  }
  0xf2   :  { %v260_v62 = vpop.f32.mrb[10].mxu0  ;;  %v1027_v61 = vld [vmem:[%s1375_s1 + $0x40] sm:$0xff]  }
  0xf3   :  { %v261_v63 = vadd.f32 %v833_v58, %v260_v62  ;;  %v931_v0 = vpop.f32.mrb[11].mxu0  ;;  %v1028_v62 = vld [vmem:[%s1375_s1 + $0x48] sm:$0xff]  }
  0xf4   :  { %v1030_v0 = vld [vmem:[%s1375_s1 + $0x58] sm:$0xff]  }
  0xf5   :  { %v264_v2 = vpack.c.bf16 %v261_v63, %v258_v60  ;;  %v1026_v60 = vld [vmem:[%s1376_s2 + $0x8] sm:$0xff]   ;;  %v1029_v63 = vld [vmem:[%s1375_s1 + $0x50] sm:$0xff]  }
  0xf6   :  { %935 = vmatpush3.bf16.xpose.msra.mxu1 %v314_v32 }
  0xf7   :  { %936 = vmatprep.subr.bf16.mxu1 %v1075_v1  ;;  %v301_v11 = vmul.bf16 %v1169_v26, %v264_v2  ;;  %v302_v13 = vmul.bf16 %v1176_v30, %v264_v2  ;;  %v303_v14 = vmul.bf16 %v1184_v33, %v264_v2  ;;  %v304_v15 = vmul.bf16 %v1192_v36, %v264_v2  ;;  %v1024_v30 = vld [vmem:[%s1375_s1 + $0x38] sm:$0xff]   ;;  %v848_v36 = vld [vmem:[%s1377_s3 + $0x3] ss:$0 sm:$0xff] }
  0xf8   :  { %v1031_v2 = vld [vmem:[%s1375_s1 + $0x60] sm:$0xff]  }
  0xfe   :  { %937 = vmatpush3.bf16.xpose.msra.mxu1 %v317_v35 }
  0xff   :  { %938 = vmatprep.subr.bf16.mxu1 %v1075_v1 }
 0x106   :  { %939 = vmatpush3.bf16.xpose.msra.mxu1 %v320_v38 }
 0x107   :  { %968 = vmatprep.subr.bf16.mxu1 %v1075_v1 }
 0x10d   :  { %941 = vmatmul.mubr.msk.bf16.vlgmr.msra.gmra.mrb[0].mxu1 %vm97_vm1, %v142_v18 }
 0x10e   :  { %972 = vmatprep.mubr.msk.bf16.mxu1 %vm1076_vm0, %v1075_v1  ;;  %969 = vmatpush3.bf16.msra.mxu1 %v1023_v16  ;;  %v853_v16 = vld [vmem:[%s1377_s3 + $0x6] ss:$0 sm:$0xff] }
 0x10f   :  { %970 = vmatprep.subr.bf16.mxu1 %v1075_v1 }
 0x112   :  { %971 = vmatpush3.bf16.msra.mxu1 %v1024_v30 }
 0x113   :  { %984 = vmatprep.subr.bf16.mxu1 %v1075_v1 }
 0x1e0   :  { %v356_v45 = vpop.f32.mrb[0].mxu1 }
 0x1e1   :  { %v357_v47 = vadd.f32 %v356_v45, %v305_v44  ;;  %v942_v48 = vpop.f32.mrb[1].mxu1 }
 0x1e2   :  { %v359_v49 = vpop.f32.mrb[2].mxu1 }
 0x1e3   :  { %v360_v50 = vadd.f32 %v359_v49, %v306_v46  ;;  %v943_v51 = vpop.f32.mrb[3].mxu1  ;;  %v364_v52 = vsel %vm363_vm2, %v357_v47, -inf }
 0x1e4   :  { %365 = vmax.xlane.f32.xlu0 %v364_v52 }
 0x1e5   :  { %v367_v53 = vsel %vm363_vm2, %v360_v50, -inf }
 0x1e8   :  { %368 = vmax.xlane.f32.xlu0 %v367_v53 }
 0x271   :  { %v366_v3 = vpop.xlane.xlu0 %365 }
 0x272   :  { %v370_v4 = vsub.f32 %v357_v47, %v366_v3  ;;  %v1032_v3 = vld [vmem:[%s1375_s1 + $0x68] sm:$0xff]  }
 0x274   :  { %v372_v5 = vmul.f32 1.442695, %v370_v4 }
 0x275   :  { %v369_v6 = vpop.xlane.xlu0 %368 }
 0x276   :  { %v371_v7 = vsub.f32 %v360_v50, %v369_v6  ;;  %1035 = vpow2.f32 %v372_v5 }
 0x278   :  { %v374_v8 = vmul.f32 1.442695, %v371_v7 }
 0x27a   :  { %1037 = vpow2.f32 %v374_v8 }
 0x280   :  { %v1036_v9 = vpop.eup %1035 }
 0x284   :  { %v1038_v10 = vpop.eup %1037 }
 0x285   :  { %v376_v12 = vpack.c.bf16 %v1038_v10, %v1036_v9 }
 0x287   :  { %953 = vmatmul.mubr.msk.bf16.vlgmr.msra.gmra.mrb[12].mxu0 %vm363_vm2, %v376_v12  ;;  %v852_v12 = vld [vmem:[%s1377_s3 + $0x5] ss:$0 sm:$0xff] }
 0x288   :  { %957 = vmatpush3.bf16.msra.mxu0 %v301_v11  ;;  %964 = vmatprep.mubr.msk.bf16.mxu0 %vm1076_vm0, %v1075_v1 }
 0x289   :  { %958 = vmatprep.subr.bf16.mxu0 %v1075_v1 }
 0x28c   :  { %959 = vmatpush3.bf16.msra.mxu0 %v302_v13 }
 0x28d   :  { %960 = vmatprep.subr.bf16.mxu0 %v1075_v1 }
 0x290   :  { %961 = vmatpush3.bf16.msra.mxu0 %v303_v14 }
 0x291   :  { %962 = vmatprep.subr.bf16.mxu0 %v1075_v1 }
 0x294   :  { %963 = vmatpush3.bf16.msra.mxu0 %v304_v15 }
 0x295   :  { %976 = vmatprep.subr.bf16.mxu0 %v1075_v1 }
 0x35a   :  { %v448_v18 = vpop.f32.mrb[12].mxu0 }
 0x35b   :  { %v449_v20 = vadd.f32 %v448_v18, %v385_v17  ;;  %v954_v21 = vpop.f32.mrb[13].mxu0 }
 0x35c   :  { %v451_v22 = vpop.f32.mrb[14].mxu0  ;;  %v1033_v21 = vld [vmem:[%s1375_s1 + $0x70] sm:$0xff]  }
 0x35d   :  { %1039 = vrcp.f32 %v449_v20  ;;  %v452_v23 = vadd.f32 %v451_v22, %v386_v19  ;;  %v955_v24 = vpop.f32.mrb[15].mxu0  ;;  %v1034_v22 = vld [vmem:[%s1375_s1 + $0x78] sm:$0xff]  }
 0x35f   :  { %1041 = vrcp.f32 %v452_v23  ;;  %v854_v23 = vld [vmem:[%s1377_s3 + $0x9] ss:$0 sm:$0xff] }
 0x367   :  { %v1040_v25 = vpop.eup %1039 }
 0x368   :  { %v457_v27 = vmul.f32 %v1040_v25, %v1036_v9 }
 0x369   :  { %v1042_v26 = vpop.eup %1041 }
 0x36a   :  { %v458_v28 = vmul.f32 %v1042_v26, %v1038_v10 }
 0x36c   :  { %v459_v29 = vpack.c.bf16 %v458_v28, %v457_v27 }
 0x36e   :  { %965 = vmatmul.mubr.msk.bf16.vlgmr.msra.gmra.mrb[16].mxu0 %vm363_vm2, %v459_v29 }
 0x36f   :  { %980 = vmatprep.mubr.msk.bf16.mxu0 %vm1076_vm0, %v1075_v1  ;;  %977 = vmatpush3.bf16.msra.mxu0 %v1025_v59 }
 0x370   :  { %978 = vmatprep.subr.bf16.mxu0 %v1075_v1 }
 0x373   :  { %979 = vmatpush3.bf16.msra.mxu0 %v1026_v60  ;;  %v867_v60 = vld [vmem:[%s1377_s3 + $0x7] ss:$0 sm:$0xff] }
 0x441   :  { %v497_v31 = vpop.f32.mrb[16].mxu0 }
 0x442   :  { %v966_v32 = vpop.f32.mrb[17].mxu0 }
 0x443   :  { %v500_v33 = vpop.f32.mrb[18].mxu0 }
 0x444   :  { %v504_v34 = vpack.c.bf16 %v500_v33, %v497_v31  ;;  %v967_v35 = vpop.f32.mrb[19].mxu0 }
 0x446   :  { %973 = vmatmul.mubr.msk.bf16.vlgmr.msra.gmra.mrb[4].mxu1 %vm97_vm1, %v504_v34 }
 0x447   :  { %1000 = vmatprep.mubr.msk.bf16.mxu1 %vm1076_vm0, %v1075_v1  ;;  %985 = vmatpush3.bf16.msra.mxu1 %v1027_v61 }
 0x448   :  { %986 = vmatprep.subr.bf16.mxu1 %v1075_v1 }
 0x44b   :  { %987 = vmatpush3.bf16.msra.mxu1 %v1028_v62 }
 0x44c   :  { %988 = vmatprep.subr.bf16.mxu1 %v1075_v1 }
 0x44f   :  { %989 = vmatpush3.bf16.msra.mxu1 %v1029_v63  ;;  %v868_v63 = vld [vmem:[%s1377_s3 + $0x8] ss:$0 sm:$0xff] }
 0x450   :  { %990 = vmatprep.subr.bf16.mxu1 %v1075_v1 }
 0x453   :  { %991 = vmatpush3.bf16.msra.mxu1 %v1030_v0 }
 0x454   :  { %992 = vmatprep.subr.bf16.mxu1 %v1075_v1 }
 0x457   :  { %993 = vmatpush3.bf16.msra.mxu1 %v1031_v2 }
 0x458   :  { %994 = vmatprep.subr.bf16.mxu1 %v1075_v1 }
 0x45b   :  { %995 = vmatpush3.bf16.msra.mxu1 %v1032_v3 }
 0x45c   :  { %996 = vmatprep.subr.bf16.mxu1 %v1075_v1 }
 0x45f   :  { %997 = vmatpush3.bf16.msra.mxu1 %v1033_v21 }
 0x460   :  { %998 = vmatprep.subr.bf16.mxu1 %v1075_v1  ;;  %v858_v1 = vld [vmem:[%s1377_s3 + $0x4] ss:$0 sm:$0xff] }
 0x463   :  { %999 = vmatpush3.bf16.msra.mxu1 %v1034_v22 }
 0x519   :  { %v558_v38 = vpop.f32.mrb[4].mxu1 }
 0x51a   :  { %v559_v39 = vadd.f32 %v848_v36, %v558_v38  ;;  %v974_v40 = vpop.f32.mrb[5].mxu1 }
 0x51b   :  { %v561_v42 = vpop.f32.mrb[6].mxu1 }
 0x51c   :  { %v1285_v43 = vadd.f32 %v559_v39, %v28_v37  ;;  %v562_v44 = vadd.f32 %v848_v36, %v561_v42  ;;  %v975_v45 = vpop.f32.mrb[7].mxu1 }
 0x51e   :  { %v1287_v46 = vadd.f32 %v562_v44, %v29_v41  ;;  %v567_v47 = vsel %vm97_vm1, %v1285_v43, 0.0 }
 0x51f   :  { %568 = vadd.xlane.f32.xlu1 %v567_v47 }
 0x520   :  { %v570_v48 = vsel %vm97_vm1, %v1287_v46, 0.0 }
 0x523   :  { %571 = vadd.xlane.f32.xlu1 %v570_v48 }
 0x5ac   :  { %v569_v49 = vpop.xlane.xlu1 %568 }
 0x5ad   :  { %v574_v50 = vmul.f32 0.03125, %v569_v49 }
 0x5af   :  { %v576_v51 = vsub.f32 %v1285_v43, %v574_v50 }
 0x5b0   :  { %v572_v52 = vpop.xlane.xlu1 %571 }
 0x5b1   :  { %v575_v53 = vmul.f32 0.03125, %v572_v52  ;;  %v578_v54 = vmul.f32 %v576_v51, %v576_v51 }
 0x5b3   :  { %v577_v55 = vsub.f32 %v1287_v46, %v575_v53  ;;  %v580_v56 = vsel %vm97_vm1, %v578_v54, 0.0 }
 0x5b4   :  { %581 = vadd.xlane.f32.xlu0 %v580_v56 }
 0x5b5   :  { %v579_v57 = vmul.f32 %v577_v55, %v577_v55 }
 0x5b7   :  { %v583_v58 = vsel %vm97_vm1, %v579_v57, 0.0 }
 0x5b8   :  { %584 = vadd.xlane.f32.xlu1 %v583_v58 }
 0x641   :  { %v582_v4 = vpop.xlane.xlu0 %581 }
 0x642   :  { %v586_v5 = vmul.f32 0.03125, %v582_v4 }
 0x644   :  { %v588_v6 = vadd.f32 1e-05, %v586_v5 }
 0x645   :  { %v585_v7 = vpop.xlane.xlu1 %584 }
 0x646   :  { %1043 = vrsqrt.f32 %v588_v6  ;;  %v587_v8 = vmul.f32 0.03125, %v585_v7 }
 0x648   :  { %v589_v9 = vadd.f32 1e-05, %v587_v8 }
 0x64a   :  { %1045 = vrsqrt.f32 %v589_v9 }
 0x650   :  { %v1044_v10 = vpop.eup %1043 }
 0x651   :  { %v592_v11 = vmul.f32 %v1044_v10, %v576_v51 }
 0x653   :  { %v598_v14 = vmul.f32 %v852_v12, %v592_v11 }
 0x654   :  { %v1046_v13 = vpop.eup %1045 }
 0x655   :  { %v593_v15 = vmul.f32 %v1046_v13, %v577_v55  ;;  %v604_v18 = vadd.f32 %v853_v16, %v598_v14 }
 0x657   :  { %v599_v17 = vmul.f32 %v852_v12, %v593_v15 }
 0x659   :  { %v605_v19 = vadd.f32 %v853_v16, %v599_v17 }
 0x65b   :  { %v606_v20 = vpack.c.bf16 %v605_v19, %v604_v18 }
 0x65d   :  { %981 = vmatmul.mubr.msk.bf16.vlgmr.msra.gmra.mrb[20].mxu0 %vm97_vm1, %v606_v20 }
 0x730   :  { %v664_v24 = vpop.f32.mrb[20].mxu0 }
 0x731   :  { %v665_v25 = vadd.f32 %v854_v23, %v664_v24  ;;  %v982_v26 = vpop.f32.mrb[21].mxu0 }
 0x732   :  { %v667_v27 = vpop.f32.mrb[22].mxu0 }
 0x733   :  { %v668_v28 = vadd.f32 %v854_v23, %v667_v27  ;;  %v983_v29 = vpop.f32.mrb[23].mxu0  ;;  %v671_v30 = vmax.f32 %v665_v25, 0.0 }
 0x735   :  { %v672_v31 = vmax.f32 %v668_v28, 0.0 }
 0x737   :  { %v673_v32 = vpack.c.bf16 %v672_v31, %v671_v30 }
 0x739   :  { %1001 = vmatmul.mubr.bf16.vlgmr.msra.gmra.mrb[8].mxu1 %v673_v32 }
 0x80c   :  { %v760_v33 = vpop.f32.mrb[8].mxu1 }
 0x80d   :  { %v761_v34 = vadd.f32 %v858_v1, %v760_v33  ;;  %v1002_v35 = vpop.f32.mrb[9].mxu1 }
 0x80e   :  { %v763_v36 = vpop.f32.mrb[10].mxu1 }
 0x80f   :  { %v764_v37 = vadd.f32 %v858_v1, %v763_v36  ;;  %v1003_v38 = vpop.f32.mrb[11].mxu1  ;;  %v767_v39 = vadd.f32 %v761_v34, %v1285_v43 }
 0x811   :  { %v769_v40 = vsel %vm97_vm1, %v767_v39, 0.0  ;;  %v768_v41 = vadd.f32 %v764_v37, %v1287_v46 }
 0x812   :  { %770 = vadd.xlane.f32.xlu0 %v769_v40 }
 0x813   :  { %v772_v42 = vsel %vm97_vm1, %v768_v41, 0.0 }
 0x814   :  { %773 = vadd.xlane.f32.xlu1 %v772_v42 }
 0x89f   :  { %v771_v44 = vpop.xlane.xlu0 %770 }
 0x8a0   :  { %v775_v45 = vmul.f32 0.03125, %v771_v44 }
 0x8a1   :  { %v774_v47 = vpop.xlane.xlu1 %773 }
 0x8a2   :  { %v777_v48 = vsub.f32 %v767_v39, %v775_v45  ;;  %v776_v49 = vmul.f32 0.03125, %v774_v47 }
 0x8a4   :  { %v778_v50 = vsub.f32 %v768_v41, %v776_v49  ;;  %v779_v51 = vmul.f32 %v777_v48, %v777_v48 }
 0x8a6   :  { %v781_v52 = vsel %vm97_vm1, %v779_v51, 0.0  ;;  %v780_v53 = vmul.f32 %v778_v50, %v778_v50 }
 0x8a7   :  { %782 = vadd.xlane.f32.xlu0 %v781_v52 }
 0x8a8   :  { %v784_v43 = vsel %vm97_vm1, %v780_v53, 0.0 }
 0x8a9   :  { %785 = vadd.xlane.f32.xlu1 %v784_v43 }
 0x934   :  { %v783_v54 = vpop.xlane.xlu0 %782 }
 0x935   :  { %v787_v46 = vmul.f32 0.03125, %v783_v54 }
 0x936   :  { %v786_v55 = vpop.xlane.xlu1 %785 }
 0x937   :  { %v789_v56 = vadd.f32 1e-05, %v787_v46  ;;  %v788_v57 = vmul.f32 0.03125, %v786_v55 }
 0x939   :  { %1047 = vrsqrt.f32 %v789_v56  ;;  %v790_v58 = vadd.f32 1e-05, %v788_v57 }
 0x93b   :  { %1049 = vrsqrt.f32 %v790_v58 }
 0x943   :  { %v1048_v59 = vpop.eup %1047 }
 0x944   :  { %v793_v61 = vmul.f32 %v1048_v59, %v777_v48 }
 0x945   :  { %v1050_v62 = vpop.eup %1049 }
 0x946   :  { %v794_v0 = vmul.f32 %v1050_v62, %v778_v50  ;;  %v799_v2 = vmul.f32 %v867_v60, %v793_v61 }
 0x948   :  { %v800_v3 = vmul.f32 %v867_v60, %v794_v0  ;;  %v805_v4 = vadd.f32 %v868_v63, %v799_v2 }
 0x94a   :  { %v806_v5 = vadd.f32 %v868_v63, %v800_v3  ;;  %807 = vst.msk [vmem:[#allocation2] sm:$0xff] %vm97_vm1, %v805_v4 }
 0x94c   :  { %808 = vst.msk [vmem:[#allocation2 + $0x8] sm:$0xff] %vm97_vm1, %v806_v5 }
 0x94d   :  { %1062 = shalt.err (!%p1059_p4)
}
 0x94e   :  { %s1063_s21 = scalar_lea.hbm %s1381_s7, 256 }
 0x94f   :  { %p1064_p5 = scmp.ne.s32.totalorder %s1381_s7, %s1063_s21  ;;  %p1067_p6 = scmp.lt.u32.totalorder %s1063_s21, %s1381_s7 }
 0x951   :  { %p1069_p7 = pnand %p1067_p6, %p1064_p5 }
 0x953   :  { %1072 = shalt.err (!%p1069_p7)
}
 0x954   :  { %s1078_s25 = smov 128   ;;  %s1079_s26 = smov 8  }
 0x955   :  { %820 = dma.vmem_to_hbm [thread:$0]  %s815_s18, 256, %s1381_s7, [#allocation3], %s1078_s25, %s1078_s25, %s1079_s26  }
 0x956   :  { %1073 = dma.done.wait [#allocation3], 256  }
 0x957   :  { %1074 = vsyncadd [#allocation3], 4294967040 }
 0x958   :  { %824 = vsyncpa [#allocation3], 1 }

</bundles_post_ra>
